<compile_context>
chip_gen: v7x
topology: tpu7x:2x2x1
jax: 0.10.0
libtpu: 0.0.40
codegen_flags: <defaults>
</compile_context>

<pallas_src>
import jax
import jax.numpy as jnp
from jax.experimental import pallas as pl
from jax.experimental.pallas import tpu as pltpu


# ----------------------------- kernel ------------------------------------- #


def _attn_pool_kernel(x_ref, w_ref, o_ref, m_sc, l_sc, acc_sc):
    # x_ref : (TB, TS, D) embeddings tile (native dtype)
    # w_ref : (1, 1, D)   Linear(D,1) weight (cast to x dtype in the wrapper)
    # o_ref : (TB, 1, D)  pooled output tile (written on the last S step)
    # m_sc/l_sc : (TB,1,1) f32 running max / running sum (online softmax)
    # acc_sc    : (TB,1,D) f32 unnormalized pooled accumulator
    j = pl.program_id(1)

    @pl.when(j == 0)
    def _init():
        m_sc[...] = jnp.full(m_sc.shape, -jnp.inf, jnp.float32)
        l_sc[...] = jnp.zeros(l_sc.shape, jnp.float32)
        acc_sc[...] = jnp.zeros(acc_sc.shape, jnp.float32)

    x = x_ref[...]                                   # (TB, TS, D)
    tb, ts, d = x.shape

    # Scores on the MXU, f32 accumulation.  NT orientation (same as the
    # canonical flash kernels): contraction dim D stays on lanes for BOTH
    # operands, so x needs no transpose/relayout and the scores come out with
    # S on the lane axis.  Only the tiny (1,1,D) weight is broadcast to
    # (TB,1,D) (cost ~ x_tile/S) to form a proper batched matmul.
    w = jnp.broadcast_to(w_ref[...], (tb, 1, d))
    s = jnp.einsum("bod,bsd->bos", w, x,
                   preferred_element_type=jnp.float32)           # (TB, 1, TS)
    # NOTE: the Linear bias is a constant per row and cancels exactly under
    # softmax(dim=1); it is intentionally not added.

    # Online-softmax update (numerically stable across sequence tiles; exact
    # single-pass softmax when there is only one S step).
    m_prev = m_sc[...]                                            # (TB, 1, 1)
    m_new = jnp.maximum(m_prev, jnp.max(s, axis=-1, keepdims=True))
    alpha = jnp.exp(m_prev - m_new)                               # rescale old stats
    e = jnp.exp(s - m_new)                                        # (TB, 1, TS)
    l_sc[...] = alpha * l_sc[...] + jnp.sum(e, axis=-1, keepdims=True)
    # Pooling contraction: 'bos,bsd->bod' is the MXU-friendly NN orientation
    # (x's S dim already on sublanes) -- x is consumed untransposed again.
    acc_sc[...] = alpha * acc_sc[...] + jnp.einsum(
        "bos,bsd->bod", e.astype(x.dtype), x,
        preferred_element_type=jnp.float32)                       # (TB, 1, D)
    m_sc[...] = m_new

    @pl.when(j == pl.num_programs(1) - 1)
    def _finalize():
        denom = l_sc[...]
        # EUP approximate reciprocal + one Newton step (~f32 accuracy) keeps
        # the divide off the VPU.
        r = pl.reciprocal(denom, approx=True)
        r = r * (2.0 - denom * r)
        o_ref[...] = (acc_sc[...] * r).astype(o_ref.dtype)


# --------------------------- block planning -------------------------------- #

_MIN_SPLIT_BYTES = 2 * 1024 * 1024  # only split a single batch block if halves stay big


def _sublane(itemsize):
    # native sublane packing: f32 -> 8, bf16 -> 16, int8/fp8 -> 32
    return max(8, 32 // int(itemsize))


def _block_bytes(tb, ts, d, itemsize):
    """Rough VMEM bytes for one grid step (incl. double-buffered I/O blocks)."""
    x_blk = tb * ts * d * itemsize          # input tile
    out_blk = tb * 8 * d * itemsize         # (TB,1,D) output tile, sublane-padded
    acc = tb * 8 * d * 4                    # f32 accumulator scratch
    soft = 4 * tb * 8 * ts * 4              # (TB,1,TS) f32 softmax temporaries
    w_b = tb * 8 * d * itemsize             # broadcast weight
    return 2 * (x_blk + out_blk) + acc + soft + w_b


def _vmem_budget():
    """(pipeline-buffer budget, vmem_limit_bytes) derived per TPU generation."""
    cap = None
    try:
        cap = int(pltpu.get_tpu_info().vmem_capacity_bytes)
    except Exception:
        cap = None
    if not cap or cap <= 0:
        cap = 64 * 1024 * 1024              # v7x physical VMEM: safe floor everywhere
    limit = min(cap * 3 // 4, 112 * 1024 * 1024)   # ~96 MiB on v5e/v6e, 48 MiB on v7x
    budget = limit * 3 // 5
    return budget, limit


def _plan(B, S, D, dtype, block_b, block_s):
    itemsize = jnp.dtype(dtype).itemsize
    sub = _sublane(itemsize)
    budget, limit = _vmem_budget()

    # ---- sequence tile (second, 'arbitrary' grid axis) ----
    if block_s is not None:
        ts = int(block_s)
    elif _block_bytes(1, S, D, itemsize) <= budget:
        ts = S                              # whole sequence per step (common case)
    else:
        # Even one full-S row is too big: split S (online softmax).  Use a
        # divisor of S so no sequence tile is ragged (raggedness along S would
        # contaminate a row's softmax, unlike raggedness along B).
        divisors = [t for t in range(sub, S, sub) if S % t == 0]
        ts = None
        for t in sorted(divisors, reverse=True):
            if _block_bytes(8, t, D, itemsize) <= budget:
                ts = t
                break
        if ts is None:
            # TODO(synk): pathological S with no small sublane-aligned divisor;
            # fall back and rely on the raised VMEM limit.
            ts = divisors[0] if divisors else S
    if not (ts == S or (S % ts == 0 and ts % sub == 0)):
        raise ValueError(f"block_s={ts} must divide S={S} and be a multiple of {sub}")

    # ---- batch tile (first, 'parallel' grid axis) ----
    per_row = max(1, _block_bytes(1, ts, D, itemsize))
    if block_b is not None:
        tb = max(1, min(int(block_b), B))
    else:
        tb = max(1, min(B, budget // per_row))
        n_b = -(-B // tb)
        if n_b == 1 and B > 1 and \
                _block_bytes(-(-B // 2), ts, D, itemsize) >= _MIN_SPLIT_BYTES:
            # Big single block: split in two so a 2-TensorCore chip (v7x) gets
            # one 'parallel' block per core.
            tb = -(-B // 2)
        elif n_b > 1 and n_b % 2 == 1:
            # Prefer an even, balanced number of 'parallel' steps.
            cand = -(-B // (n_b + 1))
            if cand >= 1 and -(-B // cand) == n_b + 1:
                tb = cand
    return tb, ts, limit


# ------------------------------ wrapper ------------------------------------ #


def attention_pooling(embeddings, attn_w, attn_b=None, *, block_b=None, block_s=None):
    """Pallas-TPU forward of AttentionPooling.

    embeddings: (B, S, D); attn_w: (1, D) = nn.Linear(D, 1).weight;
    attn_b: (1,)/(1,1) bias, accepted for API parity (a scalar bias added to
    every score cancels exactly inside softmax(dim=1), so it is folded out).
    Returns (B, D) in embeddings.dtype.
    """
    del attn_b  # cancels under the softmax over dim=1
    B, S, D = embeddings.shape
    dtype = embeddings.dtype
    w = jnp.asarray(attn_w).reshape(1, 1, D).astype(dtype)   # cast/shape once, host side

    tb, ts, vmem_limit = _plan(B, S, D, dtype, block_b, block_s)
    n_b = -(-B // tb)          # ragged last batch block is fine: rows are independent
    n_s = S // ts

    out = pl.pallas_call(
        _attn_pool_kernel,
        # (B, 1, D) so every (TB, 1, D) output block has full last-two dims
        # (no (8,128) constraint on TB); reshaped to (B, D) outside for free.
        out_shape=jax.ShapeDtypeStruct((B, 1, D), dtype),
        grid_spec=pltpu.PrefetchScalarGridSpec(
            num_scalar_prefetch=0,
            grid=(n_b, n_s),
            in_specs=[
                pl.BlockSpec((tb, ts, D), lambda i, j: (i, j, 0)),
                pl.BlockSpec((1, 1, D), lambda i, j: (0, 0, 0)),
            ],
            out_specs=pl.BlockSpec((tb, 1, D), lambda i, j: (i, 0, 0)),
            scratch_shapes=[
                pltpu.VMEM((tb, 1, 1), jnp.float32),   # running max  m
                pltpu.VMEM((tb, 1, 1), jnp.float32),   # running sum  l
                pltpu.VMEM((tb, 1, D), jnp.float32),   # unnormalized pooled acc
            ],
        ),
        compiler_params=pltpu.CompilerParams(
            dimension_semantics=("parallel", "arbitrary"),
            vmem_limit_bytes=int(vmem_limit),
        ),
    )(embeddings, w)
    return out.reshape(B, D)


# ------------------------------ reference ---------------------------------- #


def attention_pooling_ref(embeddings, attn_w, attn_b):
    """Pure-JAX reference matching the PyTorch forward (computed in f32)."""
    x = embeddings.astype(jnp.float32)
    w = jnp.asarray(attn_w).astype(jnp.float32).reshape(-1)      # (D,)
    b = jnp.asarray(attn_b).astype(jnp.float32).reshape(-1)[0]
    scores = jnp.einsum("bsd,d->bs", x, w,
                        precision=jax.lax.Precision.HIGHEST) + b
    weights = jax.nn.softmax(scores, axis=1)
    return jnp.einsum("bs,bsd->bd", weights, x,
                      precision=jax.lax.Precision.HIGHEST)


def _check(name, embeddings, attn_w, attn_b, *, tol, **block_kw):
    out = jax.block_until_ready(
        attention_pooling(embeddings, attn_w, attn_b, **block_kw))
    ref = attention_pooling_ref(embeddings, attn_w, attn_b)
    assert out.shape == ref.shape, (name, out.shape, ref.shape)
    out32 = out.astype(jnp.float32)
    err = float(jnp.max(jnp.abs(out32 - ref)))
    assert bool(jnp.allclose(out32, ref, atol=tol, rtol=tol)), (
        f"{name}: max abs err = {err}")


# -------------------------------- main -------------------------------------- #


if __name__ == "__main__":
    key = jax.random.PRNGKey(0)
    k = jax.random.split(key, 11)

    # Case 1: shapes implied by the module (batch=2, seq=8, emb=32); default
    # plan -> single block, grid (1, 1).
    x1 = jax.random.normal(k[0], (2, 8, 32), jnp.float32)
    w1 = jax.random.normal(k[1], (1, 32), jnp.float32) * 0.1
    b1 = jax.random.normal(k[2], (1, 1), jnp.float32) * 0.1
    _check("case1", x1, w1, b1, tol=1e-3)

    # Case 2: ragged batch blocks (B=9, block_b=4 -> 3 'parallel' steps, last
    # one partial).  No host-side padding; out-of-bounds rows are discarded.
    x2 = jax.random.normal(k[3], (9, 16, 128), jnp.float32)
    w2 = jax.random.normal(k[4], (1, 128), jnp.float32) * 0.1
    b2 = jax.random.normal(k[5], (1, 1), jnp.float32) * 0.1
    _check("case2", x2, w2, b2, tol=1e-3, block_b=4)

    # Case 3: sequence split (S=32, block_s=8 -> 4 'arbitrary' steps) exercises
    # the flash-style online-softmax accumulation used for long sequences.
    x3 = jax.random.normal(k[6], (8, 32, 128), jnp.float32)
    w3 = jax.random.normal(k[7], (1, 128), jnp.float32) * 0.1
    b3 = jax.random.normal(k[8], (1, 1), jnp.float32) * 0.1
    _check("case3", x3, w3, b3, tol=1e-3, block_b=8, block_s=8)

    # Case 4: bf16 inputs through the same MXU path (looser tolerance because
    # the softmax weights are cast back to bf16 before the pooling matmul),
    # with ragged batch blocks (B=5, block_b=2).
    x4 = jax.random.normal(k[9], (5, 16, 256), jnp.float32).astype(jnp.bfloat16)
    w4 = (jax.random.normal(k[10], (1, 256), jnp.float32) * 0.1).astype(jnp.bfloat16)
    b4 = jnp.zeros((1, 1), jnp.float32)
    _check("case4", x4, w4, b4, tol=3e-2, block_b=2)

    print("KERNEL_OK")
</pallas_src>

<mosaic_0001>
module attributes {stable_mosaic.version = 11 : i64} {
  func.func @_attn_pool_kernel(%arg0: i32, %arg1: i32, %arg2: memref<2x8x32xf32, #tpu.memory_space<vmem>>, %arg3: memref<1x1x32xf32, #tpu.memory_space<vmem>>, %arg4: memref<2x1x32xf32, #tpu.memory_space<vmem>>, %arg5: memref<2x1x1xf32, #tpu.memory_space<vmem>>, %arg6: memref<2x1x1xf32, #tpu.memory_space<vmem>>, %arg7: memref<2x1x32xf32, #tpu.memory_space<vmem>>) attributes {dimension_semantics = [#tpu.dimension_semantics<parallel>, #tpu.dimension_semantics<arbitrary>], iteration_bounds = array<i64: 1, 1>, scalar_prefetch = 0 : i64, scratch_operands = 3 : i64, tpu.core_type = #tpu.core_type<tc>, window_params = [{transform_indices = @transform_0, window_bounds = array<i64: 2, 8, 32>}, {pipeline_mode = #tpu.pipeline_mode<synchronous>, transform_indices = @transform_1, window_bounds = array<i64: 1, 1, 32>}, {transform_indices = @transform_2, window_bounds = array<i64: 2, 1, 32>}]} {
    %c0_i32 = arith.constant 0 : i32
    %0 = arith.cmpi eq, %arg1, %c0_i32 : i32
    %1 = arith.extui %0 : i1 to i32
    %c0_i32_0 = arith.constant 0 : i32
    %2 = arith.cmpi ne, %1, %c0_i32_0 : i32
    scf.if %2 {
      %cst_29 = arith.constant 0xFF800000 : f32
      %33 = vector.broadcast %cst_29 : f32 to vector<2x1x1xf32>
      %c0_30 = arith.constant 0 : index
      %c0_31 = arith.constant 0 : index
      %c0_32 = arith.constant 0 : index
      %34 = vector.load %arg5[%c0_30, %c0_31, %c0_32] : memref<2x1x1xf32, #tpu.memory_space<vmem>>, vector<2x1x1xf32>
      tpu.vector_store %arg5[%c0_30, %c0_31, %c0_32], %33 {strides = array<i32>} : memref<2x1x1xf32, #tpu.memory_space<vmem>>, vector<2x1x1xf32>,
      %cst_33 = arith.constant 0.000000e+00 : f32
      %35 = vector.broadcast %cst_33 : f32 to vector<2x1x1xf32>
      %c0_34 = arith.constant 0 : index
      %c0_35 = arith.constant 0 : index
      %c0_36 = arith.constant 0 : index
      %36 = vector.load %arg6[%c0_34, %c0_35, %c0_36] : memref<2x1x1xf32, #tpu.memory_space<vmem>>, vector<2x1x1xf32>
      tpu.vector_store %arg6[%c0_34, %c0_35, %c0_36], %35 {strides = array<i32>} : memref<2x1x1xf32, #tpu.memory_space<vmem>>, vector<2x1x1xf32>,
      %cst_37 = arith.constant 0.000000e+00 : f32
      %37 = vector.broadcast %cst_37 : f32 to vector<2x1x32xf32>
      %c0_38 = arith.constant 0 : index
      %c0_39 = arith.constant 0 : index
      %c0_40 = arith.constant 0 : index
      %38 = vector.load %arg7[%c0_38, %c0_39, %c0_40] : memref<2x1x32xf32, #tpu.memory_space<vmem>>, vector<2x1x32xf32>
      tpu.vector_store %arg7[%c0_38, %c0_39, %c0_40], %37 {strides = array<i32>} : memref<2x1x32xf32, #tpu.memory_space<vmem>>, vector<2x1x32xf32>,
    } else {
    }
    %c0 = arith.constant 0 : index
    %c0_1 = arith.constant 0 : index
    %c0_2 = arith.constant 0 : index
    %3 = vector.load %arg2[%c0, %c0_1, %c0_2] : memref<2x8x32xf32, #tpu.memory_space<vmem>>, vector<2x8x32xf32>
    %c0_3 = arith.constant 0 : index
    %c0_4 = arith.constant 0 : index
    %c0_5 = arith.constant 0 : index
    %4 = vector.load %arg3[%c0_3, %c0_4, %c0_5] : memref<1x1x32xf32, #tpu.memory_space<vmem>>, vector<1x1x32xf32>
    %5 = vector.shape_cast %4 : vector<1x1x32xf32> to vector<1x1x32xf32>
    %6 = vector.broadcast %5 : vector<1x1x32xf32> to vector<2x1x32xf32>
    "tpu.trace_start"() <{level = 10 : i32, message = "bod,bsd->bos"}> : () -> ()
    %cst = arith.constant dense<0.000000e+00> : vector<2x1x8xf32>
    %7 = tpu.matmul %6, %3, %cst {dimension_numbers = #tpu.dot_dimension_numbers<[2], [2], [1], [1], [0, 0, 0, 1, 1, 1], [0], [0]>} : vector<2x1x32xf32>, vector<2x8x32xf32>, vector<2x1x8xf32> -> vector<2x1x8xf32>
    "tpu.trace_stop"() : () -> ()
    %c0_6 = arith.constant 0 : index
    %c0_7 = arith.constant 0 : index
    %c0_8 = arith.constant 0 : index
    %8 = vector.load %arg5[%c0_6, %c0_7, %c0_8] : memref<2x1x1xf32, #tpu.memory_space<vmem>>, vector<2x1x1xf32>
    %cst_9 = arith.constant dense<0xFF800000> : vector<2x1xf32>
    %9 = vector.multi_reduction <maximumf>, %7, %cst_9 [2] : vector<2x1x8xf32> to vector<2x1xf32>
    %10 = vector.shape_cast %9 : vector<2x1xf32> to vector<2x1x1xf32>
    %11 = arith.maximumf %8, %10 : vector<2x1x1xf32>
    %12 = arith.subf %8, %11 : vector<2x1x1xf32>
    %13 = math.exp %12 : vector<2x1x1xf32>
    %14 = vector.broadcast %11 : vector<2x1x1xf32> to vector<2x1x8xf32>
    %15 = arith.subf %7, %14 : vector<2x1x8xf32>
    %16 = math.exp %15 : vector<2x1x8xf32>
    %c0_10 = arith.constant 0 : index
    %c0_11 = arith.constant 0 : index
    %c0_12 = arith.constant 0 : index
    %17 = vector.load %arg6[%c0_10, %c0_11, %c0_12] : memref<2x1x1xf32, #tpu.memory_space<vmem>>, vector<2x1x1xf32>
    %18 = arith.mulf %13, %17 : vector<2x1x1xf32>
    %cst_13 = arith.constant dense<0.000000e+00> : vector<2x1xf32>
    %19 = vector.multi_reduction <add>, %16, %cst_13 [2] : vector<2x1x8xf32> to vector<2x1xf32>
    %20 = vector.shape_cast %19 : vector<2x1xf32> to vector<2x1x1xf32>
    %21 = arith.addf %18, %20 : vector<2x1x1xf32>
    %c0_14 = arith.constant 0 : index
    %c0_15 = arith.constant 0 : index
    %c0_16 = arith.constant 0 : index
    %22 = vector.load %arg6[%c0_14, %c0_15, %c0_16] : memref<2x1x1xf32, #tpu.memory_space<vmem>>, vector<2x1x1xf32>
    tpu.vector_store %arg6[%c0_14, %c0_15, %c0_16], %21 {strides = array<i32>} : memref<2x1x1xf32, #tpu.memory_space<vmem>>, vector<2x1x1xf32>,
    %c0_17 = arith.constant 0 : index
    %c0_18 = arith.constant 0 : index
    %c0_19 = arith.constant 0 : index
    %23 = vector.load %arg7[%c0_17, %c0_18, %c0_19] : memref<2x1x32xf32, #tpu.memory_space<vmem>>, vector<2x1x32xf32>
    %24 = vector.broadcast %13 : vector<2x1x1xf32> to vector<2x1x32xf32>
    %25 = arith.mulf %24, %23 : vector<2x1x32xf32>
    "tpu.trace_start"() <{level = 10 : i32, message = "bos,bsd->bod"}> : () -> ()
    %cst_20 = arith.constant dense<0.000000e+00> : vector<2x1x32xf32>
    %26 = tpu.matmul %16, %3, %cst_20 {dimension_numbers = #tpu.dot_dimension_numbers<[2], [1], [1], [2], [0, 0, 0, 1, 1, 2], [0], [0]>} : vector<2x1x8xf32>, vector<2x8x32xf32>, vector<2x1x32xf32> -> vector<2x1x32xf32>
    "tpu.trace_stop"() : () -> ()
    %27 = arith.addf %25, %26 : vector<2x1x32xf32>
    %c0_21 = arith.constant 0 : index
    %c0_22 = arith.constant 0 : index
    %c0_23 = arith.constant 0 : index
    %28 = vector.load %arg7[%c0_21, %c0_22, %c0_23] : memref<2x1x32xf32, #tpu.memory_space<vmem>>, vector<2x1x32xf32>
    tpu.vector_store %arg7[%c0_21, %c0_22, %c0_23], %27 {strides = array<i32>} : memref<2x1x32xf32, #tpu.memory_space<vmem>>, vector<2x1x32xf32>,
    %c0_24 = arith.constant 0 : index
    %c0_25 = arith.constant 0 : index
    %c0_26 = arith.constant 0 : index
    %29 = vector.load %arg5[%c0_24, %c0_25, %c0_26] : memref<2x1x1xf32, #tpu.memory_space<vmem>>, vector<2x1x1xf32>
    tpu.vector_store %arg5[%c0_24, %c0_25, %c0_26], %11 {strides = array<i32>} : memref<2x1x1xf32, #tpu.memory_space<vmem>>, vector<2x1x1xf32>,
    %c0_i32_27 = arith.constant 0 : i32
    %30 = arith.cmpi eq, %arg1, %c0_i32_27 : i32
    %31 = arith.extui %30 : i1 to i32
    %c0_i32_28 = arith.constant 0 : i32
    %32 = arith.cmpi ne, %31, %c0_i32_28 : i32
    scf.if %32 {
      %c0_29 = arith.constant 0 : index
      %c0_30 = arith.constant 0 : index
      %c0_31 = arith.constant 0 : index
      %33 = vector.load %arg6[%c0_29, %c0_30, %c0_31] : memref<2x1x1xf32, #tpu.memory_space<vmem>>, vector<2x1x1xf32>
      %34 = tpu.reciprocal %33 {approx = true} : vector<2x1x1xf32> -> vector<2x1x1xf32>
      %35 = arith.mulf %33, %34 : vector<2x1x1xf32>
      %cst_32 = arith.constant 2.000000e+00 : f32
      %36 = vector.broadcast %cst_32 : f32 to vector<2x1x1xf32>
      %37 = arith.subf %36, %35 : vector<2x1x1xf32>
      %38 = arith.mulf %34, %37 : vector<2x1x1xf32>
      %c0_33 = arith.constant 0 : index
      %c0_34 = arith.constant 0 : index
      %c0_35 = arith.constant 0 : index
      %39 = vector.load %arg7[%c0_33, %c0_34, %c0_35] : memref<2x1x32xf32, #tpu.memory_space<vmem>>, vector<2x1x32xf32>
      %40 = vector.broadcast %38 : vector<2x1x1xf32> to vector<2x1x32xf32>
      %41 = arith.mulf %39, %40 : vector<2x1x32xf32>
      %c0_36 = arith.constant 0 : index
      %c0_37 = arith.constant 0 : index
      %c0_38 = arith.constant 0 : index
      %42 = vector.load %arg4[%c0_36, %c0_37, %c0_38] : memref<2x1x32xf32, #tpu.memory_space<vmem>>, vector<2x1x32xf32>
      tpu.vector_store %arg4[%c0_36, %c0_37, %c0_38], %41 {strides = array<i32>} : memref<2x1x32xf32, #tpu.memory_space<vmem>>, vector<2x1x32xf32>,
    } else {
    }
    return
  }
  func.func @transform_0(%arg0: i32, %arg1: i32) -> (i32, i32, i32) {
    %c0_i32 = arith.constant 0 : i32
    %c0_i32_0 = arith.constant 0 : i32
    return %arg0, %arg1, %c0_i32 : i32, i32, i32
  }
  func.func @transform_1(%arg0: i32, %arg1: i32) -> (i32, i32, i32) {
    %c0_i32 = arith.constant 0 : i32
    %c0_i32_0 = arith.constant 0 : i32
    %c0_i32_1 = arith.constant 0 : i32
    %c0_i32_2 = arith.constant 0 : i32
    return %c0_i32, %c0_i32_0, %c0_i32_1 : i32, i32, i32
  }
  func.func @transform_2(%arg0: i32, %arg1: i32) -> (i32, i32, i32) {
    %c0_i32 = arith.constant 0 : i32
    %c0_i32_0 = arith.constant 0 : i32
    %c0_i32_1 = arith.constant 0 : i32
    return %arg0, %c0_i32, %c0_i32_0 : i32, i32, i32
  }
}

</mosaic_0001>

<bundles_post_ra>
// kernel: tpu_custom_call.1
= control target key start
LH: loop header
LB: loop body
LE: loop exit
PB: predicated region body
PF: predicated region fallthrough
CT: control target
= control target key end

     0   :  { %7 = vsyncpa [#allocation6], 0  ;;  %s677_s0 = inlined_call_operand.hbm [shape: f32[2,8,32], index: 0, kind: input, shape index: {}]   ;;  %s678_s1 = inlined_call_operand.vmem [shape: f32[1,1,32], index: 1, kind: input, shape index: {}]   ;;  %s679_s2 = inlined_call_operand.hbm [shape: f32[2,1,32], index: 2, kind: output, shape index: {}]  }
   0x1   :  { %8 = vsyncpa [#allocation7], 0  ;;  %s583_s9 = smov [#allocation5]   ;;  %s535_s13 = scalar_lea.hbm %s677_s0, 256 }
   0x2   :  { %s14_s10 = sshll.u32 %s583_s9, 4  ;;  %p536_p0 = scmp.ne.s32.totalorder %s677_s0, %s535_s13  ;;  %s15_s10 = int_to_ptr.vmem [resolvable:$true] %s14_s10 }
   0x3   :  { %p539_p1 = scmp.lt.u32.totalorder %s535_s13, %s677_s0 }
   0x5   :  { %p541_p2 = pnand %p539_p1, %p536_p0 }
   0x7   :  { %544 = shalt.err (!%p541_p2)
}
   0x8   :  { %s545_s18 = scalar_lea.vmem %s15_s10, 256  ;;  %p550_p4 = scmp.lt.s32.totalorder %s15_s10, %s15_s10 }
   0x9   :  { %p546_p3 = scmp.ne.s32.totalorder %s15_s10, %s545_s18  ;;  %p551_p5 = scmp.lt.s32.totalorder %s545_s18, %s545_s18 }
   0xb   :  { %p552_p6 = por %p551_p5, %p550_p4 }
   0xd   :  { %p553_p7 = pnand %p552_p6, %p546_p3 }
   0xf   :  { %556 = shalt.err (!%p553_p7)
}
  0x10   :  { %s584_s19 = smov 128   ;;  %s585_s20 = smov 8  }
  0x11   :  { %20 = dma.hbm_to_vmem [thread:$0]  %s677_s0, 256, %s15_s10, [#allocation6], %s584_s19, %s584_s19, %s585_s20  }
  0x12   :  { %579 = dma.done.wait [#allocation6], 256  }
  0x13   :  { %580 = vsyncadd [#allocation6], 4294967040  ;;  %v586_v0 = vmov 0.0   ;;  %vm587_vm0 = vmmov 0   ;;  %vm41_vm1 = vcmask 261120   ;;  %v38_v1 = vld [vmem:[#allocation5] sm:$0xff]  ;;  %v213_v20 = vlaneseq }
  0x14   :  { %491 = vmatprep.subr.mxu0 %v586_v0  ;;  %493 = vmatprep.mubr.msk.f32.mxu0 %vm587_vm0, %v586_v0  ;;  %v39_v2 = vld [vmem:[#allocation5 + $0x8] sm:$0xff]  ;;  %v40_v3 = vld [vmem:[%s678_s1] sm:$0x1]  ;;  %vm30_vm2 = vcmask 0   ;;  %v588_v4 = vmov -inf   ;;  %vm193_vm3 = vcmask 57344  }
  0x15   :  { %496 = vmatprep.subr.mxu1 %v586_v0  ;;  %498 = vmatprep.mubr.msk.f32.mxu1 %vm587_vm0, %v586_v0  ;;  %31 = vst.msk [vmem:[#allocation2] sm:$0x1] %vm30_vm2, %v588_v4  ;;  %32 = vst.msk [vmem:[#allocation2 + $0x1] sm:$0x1] %vm30_vm2, %v588_v4  ;;  %v589_v11 = vmov 0   ;;  %v214_v21 = vshrl.u32 %v213_v20, 7 }
  0x16   :  { %492 = vmatpush3.xpose.msk.msra.mxu0 %vm41_vm1, %v38_v1  ;;  %497 = vmatpush3.xpose.msk.msra.mxu1 %vm41_vm1, %v39_v2  ;;  %33 = vst.msk [vmem:[#allocation3] sm:$0x1] %vm30_vm2, %v586_v0  ;;  %34 = vst.msk [vmem:[#allocation3 + $0x1] sm:$0x1] %vm30_vm2, %v586_v0  ;;  %vm269_vm4 = vcmask 64512   ;;  %vm35_vm5 = vcmask 253952  }
  0x17   :  { %501 = vmatprep.subr.mxu0 %v586_v0  ;;  %506 = vmatprep.subr.mxu1 %v586_v0  ;;  %v645_v22 = vsub.s32 0, %v214_v21  ;;  %36 = vst.msk [vmem:[#allocation4] sm:$0x1] %vm35_vm5, %v586_v0  ;;  %37 = vst.msk [vmem:[#allocation4 + $0x1] sm:$0x1] %vm35_vm5, %v586_v0  ;;  %s590_s1 = smov [#allocation8]  }
  0x18   :  { %521 = vset.pattern.permute.xlu1 %v589_v11  ;;  %522 = vset.pattern.permute.xlu0 %v589_v11  ;;  %s465_s24 = sshll.u32 %s590_s1, 4  ;;  %s466_s24 = int_to_ptr.vmem [resolvable:$true] %s465_s24 }
  0x19   :  { %494 = vmatmul.mubr.msk.f32.vlgmr.msra.gmra.mrb[0].mxu0 %vm41_vm1, %v40_v3  ;;  %499 = vmatmul.mubr.msk.f32.vlgmr.msra.gmra.mrb[0].mxu1 %vm41_vm1, %v40_v3  ;;  %s557_s25 = scalar_lea.vmem %s466_s24, 32  ;;  %p562_p9 = scmp.lt.s32.totalorder %s466_s24, %s466_s24 }
  0x1a   :  { %502 = vmatpush3.msra.mxu0 %v38_v1  ;;  %503 = vmatprep.mubr.msk.f32.mxu0 %vm587_vm0, %v586_v0  ;;  %p558_p8 = scmp.ne.s32.totalorder %s466_s24, %s557_s25  ;;  %p563_p10 = scmp.lt.s32.totalorder %s557_s25, %s557_s25 }
  0x1b   :  { %507 = vmatpush3.msra.mxu1 %v39_v2  ;;  %508 = vmatprep.mubr.msk.f32.mxu1 %vm587_vm0, %v586_v0 }
  0x1c   :  { %v191_v12 = vld [vmem:[#allocation2] sm:$0x1]  ;;  %v192_v15 = vld [vmem:[#allocation2 + $0x1] sm:$0x1]  ;;  %p564_p11 = por %p563_p10, %p562_p9 }
  0x1d   :  { %v232_v39 = vld [vmem:[#allocation3] sm:$0x1]  ;;  %v233_v42 = vld [vmem:[#allocation3 + $0x1] sm:$0x1] }
  0x1e   :  { %v247_v60 = vld [vmem:[#allocation4] sm:$0x1]  ;;  %v248_v0 = vld [vmem:[#allocation4 + $0x1] sm:$0x1]  ;;  %p565_p12 = pnand %p564_p11, %p558_p8 }
  0xec   :  { %v114_v5 = vpop.f32.mrb[0].mxu0  ;;  %v187_v6 = vpop.f32.mrb[0].mxu1 }
  0xed   :  { %v495_v7 = vpop.f32.mrb[1].mxu0  ;;  %v194_v8 = vsel %vm193_vm3, %v114_v5, -inf  ;;  %v500_v9 = vpop.f32.mrb[1].mxu1  ;;  %v197_v10 = vsel %vm193_vm3, %v187_v6, -inf }
  0xee   :  { %195 = vmax.xlane.f32.xlu0 %v194_v8 }
  0xf2   :  { %198 = vmax.xlane.f32.xlu0 %v197_v10 }
 0x17b   :  { %v196_v13 = vpop.xlane.xlu0 %195 }
 0x17c   :  { %v200_v14 = vmax.f32 %v191_v12, %v196_v13 }
 0x17e   :  { %v202_v16 = vsub.f32 %v191_v12, %v200_v14  ;;  %421 = vst.msk [vmem:[#allocation2] sm:$0x1] %vm30_vm2, %v200_v14  ;;  %210 = vperm.xlu1 %521, %v200_v14  }
 0x17f   :  { %v199_v17 = vpop.xlane.xlu0 %198 }
 0x180   :  { %v201_v18 = vmax.f32 %v192_v15, %v199_v17  ;;  %v204_v36 = vmul.f32 1.442695, %v202_v16 }
 0x182   :  { %v203_v19 = vsub.f32 %v192_v15, %v201_v18  ;;  %422 = vst.msk [vmem:[#allocation2 + $0x1] sm:$0x1] %vm30_vm2, %v201_v18  ;;  %219 = vperm.xlu1 %521, %v201_v18  }
 0x184   :  { %v206_v35 = vmul.f32 1.442695, %v203_v19 }
 0x1fd   :  { %v211_v23 = vpop.permute.xlu1 %210 }
 0x1fe   :  { %v216_v24 = vrot.slane %v211_v23, %v645_v22 }
 0x200   :  { %v226_v25 = vsub.f32 %v114_v5, %v216_v24 }
 0x201   :  { %v220_v26 = vpop.permute.xlu1 %219 }
 0x202   :  { %v228_v27 = vmul.f32 1.442695, %v226_v25  ;;  %v225_v28 = vrot.slane %v220_v26, %v645_v22 }
 0x204   :  { %523 = vpow2.f32 %v228_v27  ;;  %v227_v29 = vsub.f32 %v187_v6, %v225_v28 }
 0x206   :  { %v230_v30 = vmul.f32 1.442695, %v227_v29 }
 0x208   :  { %525 = vpow2.f32 %v230_v30 }
 0x209   :  { %527 = vpow2.f32 %v206_v35 }
 0x20a   :  { %529 = vpow2.f32 %v204_v36 }
 0x20e   :  { %v524_v31 = vpop.eup %523 }
 0x20f   :  { %504 = vmatmul.mubr.msk.f32.vlgmr.msra.gmra.mrb[2].mxu0 %vm269_vm4, %v524_v31  ;;  %v236_v32 = vsel %vm193_vm3, %v524_v31, 0.0 }
 0x210   :  { %237 = vadd.xlane.f32.xlu0 %v236_v32 }
 0x212   :  { %v526_v33 = vpop.eup %525 }
 0x213   :  { %509 = vmatmul.mubr.msk.f32.vlgmr.msra.gmra.mrb[2].mxu1 %vm269_vm4, %v526_v33  ;;  %v239_v34 = vsel %vm193_vm3, %v526_v33, 0.0  ;;  %v528_v37 = vpop.eup %527 }
 0x214   :  { %240 = vadd.xlane.f32.xlu1 %v239_v34  ;;  %v530_v38 = vpop.eup %529  ;;  %v235_v44 = vmul.f32 %v528_v37, %v233_v42 }
 0x215   :  { %v234_v40 = vmul.f32 %v530_v38, %v232_v39 }
 0x225   :  { %260 = vperm.xlu1 %521, %v528_v37  }
 0x226   :  { %251 = vperm.xlu0 %522, %v530_v38  }
 0x29d   :  { %v238_v41 = vpop.xlane.xlu0 %237 }
 0x29e   :  { %v242_v43 = vadd.f32 %v238_v41, %v234_v40 }
 0x2a0   :  { %245 = vst.msk [vmem:[#allocation3] sm:$0x1] %vm30_vm2, %v242_v43 }
 0x2a1   :  { %v241_v45 = vpop.xlane.xlu1 %240 }
 0x2a2   :  { %v243_v46 = vadd.f32 %v241_v45, %v235_v44 }
 0x2a4   :  { %246 = vst.msk [vmem:[#allocation3 + $0x1] sm:$0x1] %vm30_vm2, %v243_v46 }
 0x2a5   :  { %v252_v57 = vpop.permute.xlu0 %251  ;;  %v261_v59 = vpop.permute.xlu1 %260 }
 0x2a6   :  { %v257_v58 = vrot.slane %v252_v57, %v645_v22  ;;  %v266_v61 = vrot.slane %v261_v59, %v645_v22 }
 0x2a7   :  { %v426_v47 = vld [vmem:[#allocation3] sm:$0x1] }
 0x2a8   :  { %531 = vrcp.f32 %v426_v47  ;;  %v267_v62 = vmul.f32 %v257_v58, %v247_v60  ;;  %v268_v3 = vmul.f32 %v266_v61, %v248_v0 }
 0x2ab   :  { %v427_v48 = vld [vmem:[#allocation3 + $0x1] sm:$0x1] }
 0x2ac   :  { %533 = vrcp.f32 %v427_v48 }
 0x2b2   :  { %v532_v49 = vpop.eup %531 }
 0x2b3   :  { %v430_v50 = vmul.f32 %v532_v49, %v426_v47 }
 0x2b5   :  { %v432_v51 = vsub.f32 2.0, %v430_v50 }
 0x2b6   :  { %v534_v52 = vpop.eup %533 }
 0x2b7   :  { %v434_v53 = vmul.f32 %v532_v49, %v432_v51  ;;  %v431_v54 = vmul.f32 %v534_v52, %v427_v48 }
 0x2b9   :  { %440 = vperm.xlu0 %522, %v434_v53   ;;  %v433_v55 = vsub.f32 2.0, %v431_v54 }
 0x2bb   :  { %v435_v56 = vmul.f32 %v534_v52, %v433_v55 }
 0x2bd   :  { %449 = vperm.xlu0 %522, %v435_v56  }
 0x2e2   :  { %v339_v63 = vpop.f32.mrb[2].mxu0 }
 0x2e3   :  { %v416_v1 = vadd.f32 %v339_v63, %v267_v62  ;;  %v505_v2 = vpop.f32.mrb[3].mxu0 }
 0x2e5   :  { %419 = vst.msk [vmem:[#allocation4] sm:$0x1] %vm35_vm5, %v416_v1 }
 0x2e6   :  { %v412_v4 = vpop.f32.mrb[2].mxu1 }
 0x2e7   :  { %v417_v5 = vadd.f32 %v412_v4, %v268_v3  ;;  %v510_v6 = vpop.f32.mrb[3].mxu1 }
 0x2e9   :  { %420 = vst.msk [vmem:[#allocation4 + $0x1] sm:$0x1] %vm35_vm5, %v417_v5 }
 0x2ec   :  { %v436_v9 = vld [vmem:[#allocation4] sm:$0x1] }
 0x2f0   :  { %v437_v13 = vld [vmem:[#allocation4 + $0x1] sm:$0x1] }
 0x338   :  { %v441_v7 = vpop.permute.xlu0 %440 }
 0x339   :  { %v446_v8 = vrot.slane %v441_v7, %v645_v22 }
 0x33b   :  { %v456_v10 = vmul.f32 %v446_v8, %v436_v9 }
 0x33c   :  { %v450_v11 = vpop.permute.xlu0 %449 }
 0x33d   :  { %458 = vst.msk [vmem:[#allocation8] sm:$0x1] %vm35_vm5, %v456_v10  ;;  %v455_v12 = vrot.slane %v450_v11, %v645_v22 }
 0x33f   :  { %v457_v14 = vmul.f32 %v455_v12, %v437_v13 }
 0x341   :  { %459 = vst.msk [vmem:[#allocation8 + $0x1] sm:$0x1] %vm35_vm5, %v457_v14 }
 0x342   :  { %568 = shalt.err (!%p565_p12)
}
 0x343   :  { %s569_s28 = scalar_lea.hbm %s679_s2, 32 }
 0x344   :  { %p570_p13 = scmp.ne.s32.totalorder %s679_s2, %s569_s28  ;;  %p573_p0 = scmp.lt.u32.totalorder %s569_s28, %s679_s2 }
 0x346   :  { %p575_p1 = pnand %p573_p0, %p570_p13 }
 0x348   :  { %578 = shalt.err (!%p575_p1)
}
 0x349   :  { %s591_s5 = smov 16   ;;  %s592_s6 = smov 1  }
 0x34a   :  { %471 = dma.vmem_to_hbm [thread:$0]  %s466_s24, 32, %s679_s2, [#allocation7], %s591_s5, %s591_s5, %s592_s6  }
 0x34b   :  { %581 = dma.done.wait [#allocation7], 32  }
 0x34c   :  { %582 = vsyncadd [#allocation7], 4294967264 }
 0x34d   :  { %475 = vsyncpa [#allocation6], 1 }
 0x34e   :  { %476 = vsyncpa [#allocation7], 1 }

</bundles_post_ra>
